<compile_context>
chip_gen: v7x
topology: tpu7x:2x2x1
jax: 0.10.0
libtpu: 0.0.40
codegen_flags: <defaults>
</compile_context>

<pallas_src>
import jax
import jax.numpy as jnp
from jax.experimental import pallas as pl
from jax.experimental.pallas import tpu as pltpu

MAX_LENGTH = 10
HIDDEN = 32
OUTPUT = 64   # vocab size
_BLK = 128    # lane-aligned column block width inside the packed weight slab


def _attn_decoder_kernel(tok_ref, emb_tab_ref, hid_ref, enc_ref, w_ref, b_ref,
                         logp_ref, newhid_ref, attnw_ref):
    f32 = jnp.float32
    H = hid_ref.shape[2]
    L = attnw_ref.shape[1]
    V = logp_ref.shape[1]

    # ---- embedding lookup (in-kernel gather from the resident table) ----
    # TODO(synk): dropout_p=0.1 is treated as eval-mode identity (no RNG mask).
    tok = tok_ref[0, 0]
    emb = emb_tab_ref[pl.ds(tok, 1), :]                    # (1, H)
    hid = hid_ref[0]                                       # (1, H)

    # ---- attn_weights = softmax(Linear(cat(emb, hid))) ----
    xa = jnp.concatenate([emb, hid], axis=1)               # (1, 2H)
    attn_full = (jnp.dot(xa, w_ref[:, 0:_BLK], preferred_element_type=f32)
                 + b_ref[0:1, :])                          # (1, 128)
    logits = attn_full[:, :L]                              # (1, L)
    m = jnp.max(logits, axis=1, keepdims=True)
    e = jnp.exp(logits - m)
    attn_w = e * pl.reciprocal(jnp.sum(e, axis=1, keepdims=True), approx=True)
    attnw_ref[...] = attn_w                                # (1, L)

    # ---- attn_applied = attn_w @ encoder_outputs ----
    attn_applied = jnp.dot(attn_w, enc_ref[...], preferred_element_type=f32)  # (1, H)

    # ---- x = relu(attn_combine(cat(emb, attn_applied))) ----
    xc = jnp.concatenate([emb, attn_applied], axis=1)      # (1, 2H)
    comb_full = (jnp.dot(xc, w_ref[:, _BLK:2 * _BLK], preferred_element_type=f32)
                 + b_ref[1:2, :])                          # (1, 128)
    x = jnp.maximum(comb_full[:, :H], 0.0)                 # (1, H)

    # ---- fused GRU cell: one (1,2H)@(2H,4H) matmul gives r|z|i_n|h_n ----
    xg = jnp.concatenate([x, hid], axis=1)                 # (1, 2H)
    g = (jnp.dot(xg, w_ref[:, 2 * _BLK:3 * _BLK], preferred_element_type=f32)
         + b_ref[2:3, :])                                  # (1, 128)
    r = jax.nn.sigmoid(g[:, 0:H])
    z = jax.nn.sigmoid(g[:, H:2 * H])
    i_n = g[:, 2 * H:3 * H]                                # x@Win + b_in
    h_n = g[:, 3 * H:4 * H]                                # hid@Whn + b_hn
    n = jnp.tanh(i_n + r * h_n)
    h_new = (1.0 - z) * n + z * hid                        # (1, H)
    newhid_ref[0] = h_new

    # ---- log_softmax(out(h_new)) ----
    xo = jnp.concatenate([h_new, jnp.zeros_like(h_new)], axis=1)   # (1, 2H)
    out_full = (jnp.dot(xo, w_ref[:, 3 * _BLK:4 * _BLK], preferred_element_type=f32)
                + b_ref[3:4, :])                           # (1, 128)
    out_logits = out_full[:, :V]                           # (1, V)
    m2 = jnp.max(out_logits, axis=1, keepdims=True)
    lse = m2 + jnp.log(jnp.sum(jnp.exp(out_logits - m2), axis=1, keepdims=True))
    logp_ref[...] = out_logits - lse


def preprocess_params(params):
    """One-time packing of PyTorch-layout params into two kernel slabs."""
    H, L, V = HIDDEN, MAX_LENGTH, OUTPUT
    assert L <= _BLK and H <= _BLK and 4 * H <= _BLK and V <= _BLK

    W = jnp.zeros((2 * H, 4 * _BLK), jnp.float32)
    # attn block: cols [0, 128), rows = [emb | hid]
    W = W.at[:, 0:L].set(params["attn_W"].T)                       # (2H, L)
    # combine block: cols [128, 256), rows = [emb | attn_applied]
    W = W.at[:, _BLK:_BLK + H].set(params["combine_W"].T)          # (2H, H)
    # GRU block: cols [256, 384), rows = [x | hid], cols = r|z|i_n|h_n
    wih, whh = params["gru_w_ih"], params["gru_w_hh"]
    g0 = 2 * _BLK
    W = W.at[0:H,     g0 + 0 * H:g0 + 1 * H].set(wih[0:H].T)       # W_ir^T
    W = W.at[H:2 * H, g0 + 0 * H:g0 + 1 * H].set(whh[0:H].T)       # W_hr^T
    W = W.at[0:H,     g0 + 1 * H:g0 + 2 * H].set(wih[H:2 * H].T)   # W_iz^T
    W = W.at[H:2 * H, g0 + 1 * H:g0 + 2 * H].set(whh[H:2 * H].T)   # W_hz^T
    W = W.at[0:H,     g0 + 2 * H:g0 + 3 * H].set(wih[2 * H:].T)    # W_in^T
    W = W.at[H:2 * H, g0 + 3 * H:g0 + 4 * H].set(whh[2 * H:].T)    # W_hn^T
    # out block: cols [384, 512), rows 0:H = out.weight^T, rows H:2H stay zero
    W = W.at[0:H, 3 * _BLK:3 * _BLK + V].set(params["out_W"].T)    # (H, V)

    b = jnp.zeros((4, _BLK), jnp.float32)
    b = b.at[0, 0:L].set(params["attn_b"])
    b = b.at[1, 0:H].set(params["combine_b"])
    bih, bhh = params["gru_b_ih"], params["gru_b_hh"]
    b = b.at[2, 0 * H:1 * H].set(bih[0:H] + bhh[0:H])              # r bias (merged)
    b = b.at[2, 1 * H:2 * H].set(bih[H:2 * H] + bhh[H:2 * H])      # z bias (merged)
    b = b.at[2, 2 * H:3 * H].set(bih[2 * H:])                      # b_in (kept separate)
    b = b.at[2, 3 * H:4 * H].set(bhh[2 * H:])                      # b_hn (kept separate)
    b = b.at[3, 0:V].set(params["out_b"])

    return {
        "emb_table": params["embedding"].astype(jnp.float32),      # (V, H)
        "w_slab": W,                                               # (2H, 512)
        "b_slab": b,                                               # (4, 128)
    }


@jax.jit
def attn_decoder_forward(prep, input_idx, hidden, encoder_outputs):
    """One decode step of AttnDecoderRNN.

    input_idx:        (1, 1) int32 token index
    hidden:           (1, 1, H) f32
    encoder_outputs:  (L, H) f32
    Returns (log_probs (1, V), new_hidden (1, 1, H), attn_weights (1, L)).
    """
    V, H = prep["emb_table"].shape
    L = encoder_outputs.shape[0]

    smem = pl.BlockSpec(memory_space=pltpu.MemorySpace.SMEM)
    vmem = pl.BlockSpec(memory_space=pltpu.MemorySpace.VMEM)

    log_probs, new_hidden, attn_weights = pl.pallas_call(
        _attn_decoder_kernel,
        out_shape=(
            jax.ShapeDtypeStruct((1, V), jnp.float32),
            jax.ShapeDtypeStruct((1, 1, H), jnp.float32),
            jax.ShapeDtypeStruct((1, L), jnp.float32),
        ),
        in_specs=[smem, vmem, vmem, vmem, vmem, vmem],
        out_specs=(vmem, vmem, vmem),
    )(
        input_idx.astype(jnp.int32),
        prep["emb_table"],
        hidden,
        encoder_outputs,
        prep["w_slab"],
        prep["b_slab"],
    )
    return log_probs, new_hidden, attn_weights


def init_params(key, hidden_size=HIDDEN, output_size=OUTPUT, max_length=MAX_LENGTH):
    ks = jax.random.split(key, 12)
    H, V, L = hidden_size, output_size, max_length

    def u(k, shape, fan_in):
        bound = 1.0 / jnp.sqrt(fan_in)
        return jax.random.uniform(k, shape, jnp.float32, -bound, bound)

    return {
        "embedding": jax.random.normal(ks[0], (V, H), jnp.float32),
        "attn_W": u(ks[1], (L, 2 * H), 2 * H),
        "attn_b": u(ks[2], (L,), 2 * H),
        "combine_W": u(ks[3], (H, 2 * H), 2 * H),
        "combine_b": u(ks[4], (H,), 2 * H),
        "gru_w_ih": u(ks[5], (3 * H, H), H),
        "gru_w_hh": u(ks[6], (3 * H, H), H),
        "gru_b_ih": u(ks[7], (3 * H,), H),
        "gru_b_hh": u(ks[8], (3 * H,), H),
        "out_W": u(ks[9], (V, H), H),
        "out_b": u(ks[10], (V,), H),
    }


if __name__ == "__main__":
    key = jax.random.PRNGKey(0)
    k_params, k_hid, k_enc, k_tok = jax.random.split(key, 4)

    params = init_params(k_params)
    prep = preprocess_params(params)   # one-time packing (not per step)

    input_idx = jax.random.randint(k_tok, (1, 1), 0, OUTPUT, dtype=jnp.int32)
    hidden = jax.random.normal(k_hid, (1, 1, HIDDEN), jnp.float32)
    encoder_outputs = jax.random.normal(k_enc, (MAX_LENGTH, HIDDEN), jnp.float32)

    log_probs, new_hidden, attn_weights = attn_decoder_forward(
        prep, input_idx, hidden, encoder_outputs
    )
    jax.block_until_ready((log_probs, new_hidden, attn_weights))

    assert log_probs.shape == (1, OUTPUT)
    assert new_hidden.shape == (1, 1, HIDDEN)
    assert attn_weights.shape == (1, MAX_LENGTH)
    assert bool(jnp.all(jnp.isfinite(log_probs)))
    assert bool(jnp.all(jnp.isfinite(new_hidden)))
    assert bool(jnp.all(jnp.isfinite(attn_weights)))
    print("KERNEL_OK")
</pallas_src>

<mosaic_0001>
module attributes {stable_mosaic.version = 11 : i64} {
  func.func @_attn_decoder_kernel(%arg0: memref<1x1xi32, #tpu.memory_space<smem>>, %arg1: memref<64x32xf32, #tpu.memory_space<vmem>>, %arg2: memref<1x1x32xf32, #tpu.memory_space<vmem>>, %arg3: memref<10x32xf32, #tpu.memory_space<vmem>>, %arg4: memref<64x512xf32, #tpu.memory_space<vmem>>, %arg5: memref<4x128xf32, #tpu.memory_space<vmem>>, %arg6: memref<1x64xf32, #tpu.memory_space<vmem>>, %arg7: memref<1x1x32xf32, #tpu.memory_space<vmem>>, %arg8: memref<1x10xf32, #tpu.memory_space<vmem>>) attributes {dimension_semantics = [], scalar_prefetch = 0 : i64, scratch_operands = 0 : i64, tpu.core_type = #tpu.core_type<tc>} {
    %c0 = arith.constant 0 : index
    %c0_0 = arith.constant 0 : index
    %0 = memref.load %arg0[%c0, %c0_0] : memref<1x1xi32, #tpu.memory_space<smem>>
    %1 = arith.index_cast %0 : i32 to index
    %c0_1 = arith.constant 0 : index
    %2 = vector.load %arg1[%1, %c0_1] : memref<64x32xf32, #tpu.memory_space<vmem>>, vector<1x32xf32>
    %c0_2 = arith.constant 0 : index
    %c0_3 = arith.constant 0 : index
    %c0_4 = arith.constant 0 : index
    %3 = vector.load %arg2[%c0_2, %c0_3, %c0_4] : memref<1x1x32xf32, #tpu.memory_space<vmem>>, vector<1x1x32xf32>
    %4 = vector.shape_cast %3 : vector<1x1x32xf32> to vector<1x32xf32>
    %5 = tpu.concatenate %2, %4 in 1 : vector<1x32xf32>, vector<1x32xf32> -> vector<1x64xf32>
    %c0_5 = arith.constant 0 : index
    %c0_6 = arith.constant 0 : index
    %6 = vector.load %arg4[%c0_5, %c0_6] : memref<64x512xf32, #tpu.memory_space<vmem>>, vector<64x128xf32>
    %cst = arith.constant dense<0.000000e+00> : vector<1x128xf32>
    %7 = tpu.matmul %5, %6, %cst {dimension_numbers = #tpu.dot_dimension_numbers<[1], [0], [0], [1], [0, 0, 1, 1], [], []>} : vector<1x64xf32>, vector<64x128xf32>, vector<1x128xf32> -> vector<1x128xf32>
    %c0_7 = arith.constant 0 : index
    %c0_8 = arith.constant 0 : index
    %8 = vector.load %arg5[%c0_7, %c0_8] : memref<4x128xf32, #tpu.memory_space<vmem>>, vector<1x128xf32>
    %9 = arith.addf %7, %8 : vector<1x128xf32>
    %10 = vector.extract_strided_slice %9 {offsets = [0, 0], sizes = [1, 10], strides = [1, 1]} : vector<1x128xf32> to vector<1x10xf32>
    %cst_9 = arith.constant dense<0xFF800000> : vector<1xf32>
    %11 = vector.multi_reduction <maximumf>, %10, %cst_9 [1] : vector<1x10xf32> to vector<1xf32>
    %12 = vector.shape_cast %11 : vector<1xf32> to vector<1x1xf32>
    %13 = vector.broadcast %12 : vector<1x1xf32> to vector<1x10xf32>
    %14 = arith.subf %10, %13 : vector<1x10xf32>
    %15 = math.exp %14 : vector<1x10xf32>
    %cst_10 = arith.constant dense<0.000000e+00> : vector<1xf32>
    %16 = vector.multi_reduction <add>, %15, %cst_10 [1] : vector<1x10xf32> to vector<1xf32>
    %17 = vector.shape_cast %16 : vector<1xf32> to vector<1x1xf32>
    %18 = tpu.reciprocal %17 {approx = true} : vector<1x1xf32> -> vector<1x1xf32>
    %19 = vector.broadcast %18 : vector<1x1xf32> to vector<1x10xf32>
    %20 = arith.mulf %15, %19 : vector<1x10xf32>
    %c0_11 = arith.constant 0 : index
    %c0_12 = arith.constant 0 : index
    %21 = vector.load %arg8[%c0_11, %c0_12] : memref<1x10xf32, #tpu.memory_space<vmem>>, vector<1x10xf32>
    tpu.vector_store %arg8[%c0_11, %c0_12], %20 {strides = array<i32>} : memref<1x10xf32, #tpu.memory_space<vmem>>, vector<1x10xf32>,
    %c0_13 = arith.constant 0 : index
    %c0_14 = arith.constant 0 : index
    %22 = vector.load %arg3[%c0_13, %c0_14] : memref<10x32xf32, #tpu.memory_space<vmem>>, vector<10x32xf32>
    %cst_15 = arith.constant dense<0.000000e+00> : vector<1x32xf32>
    %23 = tpu.matmul %20, %22, %cst_15 {dimension_numbers = #tpu.dot_dimension_numbers<[1], [0], [0], [1], [0, 0, 1, 1], [], []>} : vector<1x10xf32>, vector<10x32xf32>, vector<1x32xf32> -> vector<1x32xf32>
    %24 = tpu.concatenate %2, %23 in 1 : vector<1x32xf32>, vector<1x32xf32> -> vector<1x64xf32>
    %c0_16 = arith.constant 0 : index
    %c128 = arith.constant 128 : index
    %25 = vector.load %arg4[%c0_16, %c128] : memref<64x512xf32, #tpu.memory_space<vmem>>, vector<64x128xf32>
    %cst_17 = arith.constant dense<0.000000e+00> : vector<1x128xf32>
    %26 = tpu.matmul %24, %25, %cst_17 {dimension_numbers = #tpu.dot_dimension_numbers<[1], [0], [0], [1], [0, 0, 1, 1], [], []>} : vector<1x64xf32>, vector<64x128xf32>, vector<1x128xf32> -> vector<1x128xf32>
    %c1 = arith.constant 1 : index
    %c0_18 = arith.constant 0 : index
    %27 = vector.load %arg5[%c1, %c0_18] : memref<4x128xf32, #tpu.memory_space<vmem>>, vector<1x128xf32>
    %28 = arith.addf %26, %27 : vector<1x128xf32>
    %29 = vector.extract_strided_slice %28 {offsets = [0, 0], sizes = [1, 32], strides = [1, 1]} : vector<1x128xf32> to vector<1x32xf32>
    %cst_19 = arith.constant 0.000000e+00 : f32
    %30 = vector.broadcast %cst_19 : f32 to vector<1x32xf32>
    %31 = arith.maximumf %29, %30 : vector<1x32xf32>
    %32 = tpu.concatenate %31, %4 in 1 : vector<1x32xf32>, vector<1x32xf32> -> vector<1x64xf32>
    %c0_20 = arith.constant 0 : index
    %c256 = arith.constant 256 : index
    %33 = vector.load %arg4[%c0_20, %c256] : memref<64x512xf32, #tpu.memory_space<vmem>>, vector<64x128xf32>
    %cst_21 = arith.constant dense<0.000000e+00> : vector<1x128xf32>
    %34 = tpu.matmul %32, %33, %cst_21 {dimension_numbers = #tpu.dot_dimension_numbers<[1], [0], [0], [1], [0, 0, 1, 1], [], []>} : vector<1x64xf32>, vector<64x128xf32>, vector<1x128xf32> -> vector<1x128xf32>
    %c2 = arith.constant 2 : index
    %c0_22 = arith.constant 0 : index
    %35 = vector.load %arg5[%c2, %c0_22] : memref<4x128xf32, #tpu.memory_space<vmem>>, vector<1x128xf32>
    %36 = arith.addf %34, %35 : vector<1x128xf32>
    %37 = vector.extract_strided_slice %36 {offsets = [0, 0], sizes = [1, 32], strides = [1, 1]} : vector<1x128xf32> to vector<1x32xf32>
    %38 = arith.negf %37 : vector<1x32xf32>
    %39 = math.exp %38 : vector<1x32xf32>
    %cst_23 = arith.constant 1.000000e+00 : f32
    %40 = vector.broadcast %cst_23 : f32 to vector<1x32xf32>
    %41 = arith.addf %40, %39 : vector<1x32xf32>
    %42 = arith.divf %40, %41 : vector<1x32xf32>
    %43 = vector.extract_strided_slice %36 {offsets = [0, 32], sizes = [1, 32], strides = [1, 1]} : vector<1x128xf32> to vector<1x32xf32>
    %44 = arith.negf %43 : vector<1x32xf32>
    %45 = math.exp %44 : vector<1x32xf32>
    %cst_24 = arith.constant 1.000000e+00 : f32
    %46 = vector.broadcast %cst_24 : f32 to vector<1x32xf32>
    %47 = arith.addf %46, %45 : vector<1x32xf32>
    %48 = arith.divf %46, %47 : vector<1x32xf32>
    %49 = vector.extract_strided_slice %36 {offsets = [0, 64], sizes = [1, 32], strides = [1, 1]} : vector<1x128xf32> to vector<1x32xf32>
    %50 = vector.extract_strided_slice %36 {offsets = [0, 96], sizes = [1, 32], strides = [1, 1]} : vector<1x128xf32> to vector<1x32xf32>
    %51 = arith.mulf %42, %50 : vector<1x32xf32>
    %52 = arith.addf %49, %51 : vector<1x32xf32>
    %53 = math.tanh %52 : vector<1x32xf32>
    %cst_25 = arith.constant 1.000000e+00 : f32
    %54 = vector.broadcast %cst_25 : f32 to vector<1x32xf32>
    %55 = arith.subf %54, %48 : vector<1x32xf32>
    %56 = arith.mulf %55, %53 : vector<1x32xf32>
    %57 = arith.mulf %48, %4 : vector<1x32xf32>
    %58 = arith.addf %56, %57 : vector<1x32xf32>
    %c0_26 = arith.constant 0 : index
    %c0_27 = arith.constant 0 : index
    %c0_28 = arith.constant 0 : index
    %59 = vector.load %arg7[%c0_26, %c0_27, %c0_28] : memref<1x1x32xf32, #tpu.memory_space<vmem>>, vector<1x1x32xf32>
    %60 = vector.shape_cast %59 : vector<1x1x32xf32> to vector<1x32xf32>
    %61 = vector.shape_cast %58 : vector<1x32xf32> to vector<1x1x32xf32>
    tpu.vector_store %arg7[%c0_26, %c0_27, %c0_28], %61 {strides = array<i32>} : memref<1x1x32xf32, #tpu.memory_space<vmem>>, vector<1x1x32xf32>,
    %cst_29 = arith.constant 0.000000e+00 : f32
    %62 = vector.broadcast %cst_29 : f32 to vector<1x32xf32>
    %63 = tpu.concatenate %58, %62 in 1 : vector<1x32xf32>, vector<1x32xf32> -> vector<1x64xf32>
    %c0_30 = arith.constant 0 : index
    %c384 = arith.constant 384 : index
    %64 = vector.load %arg4[%c0_30, %c384] : memref<64x512xf32, #tpu.memory_space<vmem>>, vector<64x128xf32>
    %cst_31 = arith.constant dense<0.000000e+00> : vector<1x128xf32>
    %65 = tpu.matmul %63, %64, %cst_31 {dimension_numbers = #tpu.dot_dimension_numbers<[1], [0], [0], [1], [0, 0, 1, 1], [], []>} : vector<1x64xf32>, vector<64x128xf32>, vector<1x128xf32> -> vector<1x128xf32>
    %c3 = arith.constant 3 : index
    %c0_32 = arith.constant 0 : index
    %66 = vector.load %arg5[%c3, %c0_32] : memref<4x128xf32, #tpu.memory_space<vmem>>, vector<1x128xf32>
    %67 = arith.addf %65, %66 : vector<1x128xf32>
    %68 = vector.extract_strided_slice %67 {offsets = [0, 0], sizes = [1, 64], strides = [1, 1]} : vector<1x128xf32> to vector<1x64xf32>
    %cst_33 = arith.constant dense<0xFF800000> : vector<1xf32>
    %69 = vector.multi_reduction <maximumf>, %68, %cst_33 [1] : vector<1x64xf32> to vector<1xf32>
    %70 = vector.shape_cast %69 : vector<1xf32> to vector<1x1xf32>
    %71 = vector.broadcast %70 : vector<1x1xf32> to vector<1x64xf32>
    %72 = arith.subf %68, %71 : vector<1x64xf32>
    %73 = math.exp %72 : vector<1x64xf32>
    %cst_34 = arith.constant dense<0.000000e+00> : vector<1xf32>
    %74 = vector.multi_reduction <add>, %73, %cst_34 [1] : vector<1x64xf32> to vector<1xf32>
    %75 = vector.shape_cast %74 : vector<1xf32> to vector<1x1xf32>
    %76 = math.log %75 : vector<1x1xf32>
    %77 = arith.addf %70, %76 : vector<1x1xf32>
    %78 = vector.broadcast %77 : vector<1x1xf32> to vector<1x64xf32>
    %79 = arith.subf %68, %78 : vector<1x64xf32>
    %c0_35 = arith.constant 0 : index
    %c0_36 = arith.constant 0 : index
    %80 = vector.load %arg6[%c0_35, %c0_36] : memref<1x64xf32, #tpu.memory_space<vmem>>, vector<1x64xf32>
    tpu.vector_store %arg6[%c0_35, %c0_36], %79 {strides = array<i32>} : memref<1x64xf32, #tpu.memory_space<vmem>>, vector<1x64xf32>,
    return
  }
}

</mosaic_0001>

<bundles_post_ra>
// kernel: attn_decoder_forward.1
= control target key start
LH: loop header
LB: loop body
LE: loop exit
PB: predicated region body
PF: predicated region fallthrough
CT: control target
= control target key end

     0   :  { %15 = vsyncpa [#allocation4], 0  ;;  %s1064_s0 = inlined_call_operand.<no memory space> [shape: s32[1,1], index: 0, kind: input, shape index: {}]   ;;  %s1065_s1 = inlined_call_operand.vmem [shape: f32[64,32], index: 1, kind: input, shape index: {}]   ;;  %s1066_s2 = inlined_call_operand.vmem [shape: f32[1,1,32], index: 2, kind: input, shape index: {}]   ;;  %s1067_s3 = inlined_call_operand.vmem [shape: f32[10,32], index: 3, kind: input, shape index: {}]   ;;  %s1068_s4 = inlined_call_operand.hbm [shape: f32[64,512], index: 4, kind: input, shape index: {}]   ;;  %s1069_s5 = inlined_call_operand.vmem [shape: f32[4,128], index: 5, kind: input, shape index: {}]   ;;  %s1070_s6 = inlined_call_operand.hbm [shape: f32[1,64], index: 6, kind: output, shape index: {0}]   ;;  %s1071_s7 = inlined_call_operand.hbm [shape: f32[1,1,32], index: 7, kind: output, shape index: {1}]   ;;  %s1072_s8 = inlined_call_operand.hbm [shape: f32[1,10], index: 8, kind: output, shape index: {2}]  }
   0x1   :  { %16 = vsyncpa [#allocation5], 0 }
   0x2   :  { %17 = vsyncpa [#allocation8], 0  ;;  %s878_s27 = smov [#allocation3]   ;;  %s784_s9 = scalar_lea.hbm %s1068_s4, 4096 }
   0x3   :  { %s31_s28 = sshll.u32 %s878_s27, 4  ;;  %p785_p0 = scmp.ne.s32.totalorder %s1068_s4, %s784_s9  ;;  %s32_s28 = int_to_ptr.vmem [resolvable:$true] %s31_s28 }
   0x4   :  { %p788_p1 = scmp.lt.u32.totalorder %s784_s9, %s1068_s4 }
   0x6   :  { %p790_p2 = pnand %p788_p1, %p785_p0 }
   0x8   :  { %793 = shalt.err (!%p790_p2)
}
   0x9   :  { %s794_s14 = scalar_lea.vmem %s32_s28, 4096  ;;  %p799_p4 = scmp.lt.s32.totalorder %s32_s28, %s32_s28 }
   0xa   :  { %p795_p3 = scmp.ne.s32.totalorder %s32_s28, %s794_s14  ;;  %p800_p5 = scmp.lt.s32.totalorder %s794_s14, %s794_s14 }
   0xc   :  { %p801_p6 = por %p800_p5, %p799_p4 }
   0xe   :  { %p802_p7 = pnand %p801_p6, %p795_p3 }
  0x10   :  { %805 = shalt.err (!%p802_p7)
}
  0x11   :  { %s879_s15 = smov 512   ;;  %s880_s16 = smov 32  }
  0x12   :  { %37 = dma.hbm_to_vmem [thread:$0]  %s1068_s4, 4096, %s32_s28, [#allocation4], %s879_s15, %s879_s15, %s880_s16  }
  0x13   :  { %872 = dma.done.wait [#allocation4], 4096  }
  0x14   :  { %873 = vsyncadd [#allocation4], 4294963200  ;;  %v881_v0 = vmov 0.0|0.0   ;;  %vm882_vm0 = vmmov 0   ;;  %v883_v1 = vmov 0.0   ;;  %v57_v3 = vld [vmem:[#allocation3] sm:$0xff]  ;;  %s44_s23 = scalar_lea.vmem %s1065_s1, %s1064_s0 }
  0x15   :  { %706 = vmatprep.subr.bf16.mxu0 %v881_v0  ;;  %639 = vmatprep.mubr.msk.f32.mxu0 %vm882_vm0, %v883_v1  ;;  %v576_v2 = vld [vmem:[%s1066_s2] ss:$0 sm:$0xff]  ;;  %vm55_vm1 = vcmask 261120   ;;  %vm66_vm2 = vcmask 523264   ;;  %vm140_vm3 = vcmask 73728   ;;  %vm159_vm4 = vcmask 1041408  }
  0x16   :  { %718 = vmatprep.subr.bf16.mxu1 %v881_v0  ;;  %646 = vmatprep.mubr.msk.f32.mxu1 %vm882_vm0, %v883_v1  ;;  %v58_v4 = vld [vmem:[#allocation3 + $0x20] sm:$0xff]  ;;  %v154_v29 = vld [vmem:[%s1067_s3 + $0x8] sm:$0x3]  ;;  %vm884_vm5 = vmmov 1   ;;  %vm155_vm7 = vcmask 80896   ;;  %v322_v46 = vld [vmem:[#allocation3 + $0x10] sm:$0xff] }
  0x17   :  { %52 = vrot.lane.b32.xlu0 %v576_v2, %s880_s16  ;;  %v707_v5 = vpack.c.bf16 %v58_v4, %v57_v3  ;;  %v59_v6 = vld [vmem:[#allocation3 + $0x40] sm:$0xff]  ;;  %vm720_vm6 = vmpackc.low %vm159_vm4, %vm884_vm5  ;;  %v238_v34 = vld [vmem:[#allocation3 + $0x8] sm:$0xff]  ;;  %s885_s9 = smov 64   ;;  %s886_s10 = smov 96   ;;  %vm433_vm8 = vcmask 253952   ;;  %vm518_vm9 = vcmask 516096  }
  0x18   :  { %v60_v7 = vld [vmem:[#allocation3 + $0x60] sm:$0xff]  ;;  %v239_v35 = vld [vmem:[#allocation3 + $0x28] sm:$0xff]  ;;  %v323_v47 = vld [vmem:[#allocation3 + $0x30] sm:$0xff]  ;;  %s887_s13 = smov [#allocation7]  }
  0x19   :  { %708 = vmatpush3.bf16.msra.mxu0 %v707_v5  ;;  %v710_v8 = vpack.c.bf16 %v60_v7, %v59_v6  ;;  %v61_v9 = vld [vmem:[#allocation3 + $0x80] sm:$0xff]  ;;  %v240_v36 = vld [vmem:[#allocation3 + $0x48] sm:$0xff]  ;;  %v723_v37 = vpack.c.bf16 %v239_v35, %v238_v34  ;;  %v324_v48 = vld [vmem:[#allocation3 + $0x50] sm:$0xff]  ;;  %v735_v49 = vpack.c.bf16 %v323_v47, %v322_v46  ;;  %s549_s14 = sshll.u32 %s887_s13, 4  ;;  %s550_s14 = int_to_ptr.vmem [resolvable:$true] %s549_s14 }
  0x1a   :  { %709 = vmatprep.subr.bf16.mxu0 %v881_v0  ;;  %v62_v10 = vld [vmem:[#allocation3 + $0xa0] sm:$0xff]  ;;  %v241_v38 = vld [vmem:[#allocation3 + $0x68] sm:$0xff]  ;;  %v325_v50 = vld [vmem:[#allocation3 + $0x70] sm:$0xff]  ;;  %s806_s15 = scalar_lea.vmem %s550_s14, 16  ;;  %p811_p9 = scmp.lt.s32.totalorder %s550_s14, %s550_s14 }
  0x1b   :  { %v713_v11 = vpack.c.bf16 %v62_v10, %v61_v9  ;;  %v63_v12 = vld [vmem:[#allocation3 + $0xc0] sm:$0xff]  ;;  %v726_v39 = vpack.c.bf16 %v241_v38, %v240_v36  ;;  %v242_v40 = vld [vmem:[#allocation3 + $0x88] sm:$0xff]  ;;  %v738_v51 = vpack.c.bf16 %v325_v50, %v324_v48  ;;  %v326_v52 = vld [vmem:[#allocation3 + $0x90] sm:$0xff]  ;;  %p807_p8 = scmp.ne.s32.totalorder %s550_s14, %s806_s15 }
  0x1c   :  { %v64_v13 = vld [vmem:[#allocation3 + $0xe0] sm:$0xff]  ;;  %v243_v41 = vld [vmem:[#allocation3 + $0xa8] sm:$0xff]  ;;  %v327_v53 = vld [vmem:[#allocation3 + $0xb0] sm:$0xff] }
  0x1d   :  { %711 = vmatpush3.bf16.msra.mxu0 %v710_v8  ;;  %v716_v14 = vpack.c.bf16 %v64_v13, %v63_v12  ;;  %v968_v15 = vld [vmem:[%s44_s23] sm:$0x1]  ;;  %v729_v42 = vpack.c.bf16 %v243_v41, %v242_v40  ;;  %v244_v43 = vld [vmem:[#allocation3 + $0xc8] sm:$0xff]  ;;  %v741_v54 = vpack.c.bf16 %v327_v53, %v326_v52  ;;  %v328_v59 = vld [vmem:[#allocation3 + $0xd0] sm:$0xff] }
  0x1e   :  { %712 = vmatprep.subr.bf16.mxu0 %v881_v0  ;;  %v65_v18 = vld [vmem:[%s1069_s5] sm:$0x1]  ;;  %v245_v44 = vld [vmem:[#allocation3 + $0xe8] sm:$0xff]  ;;  %v329_v60 = vld [vmem:[#allocation3 + $0xf0] sm:$0xff] }
  0x1f   :  { %v153_v28 = vld [vmem:[%s1067_s3] sm:$0xff]  ;;  %v732_v45 = vpack.c.bf16 %v245_v44, %v244_v43  ;;  %v744_v61 = vpack.c.bf16 %v329_v60, %v328_v59 }
  0x20   :  { %v719_v30 = vpack.c.bf16 %v154_v29, %v153_v28  ;;  %v246_v62 = vld [vmem:[%s1069_s5 + $0x1] sm:$0x1]  ;;  %v442_v28 = vld [vmem:[#allocation3 + $0xd8] sm:$0xff]  ;;  %v444_v38 = vld [vmem:[%s1069_s5 + $0x3] sm:$0x1] }
  0x21   :  { %714 = vmatpush3.bf16.msra.mxu0 %v713_v11  ;;  %v443_v29 = vld [vmem:[#allocation3 + $0xf8] sm:$0xff] }
  0x22   :  { %715 = vmatprep.subr.bf16.mxu0 %v881_v0  ;;  %721 = vmatpush3.bf16.msk.msra.mxu1 %vm720_vm6, %v719_v30  ;;  %v756_v30 = vpack.c.bf16 %v443_v29, %v442_v28 }
  0x23   :  { %722 = vmatprep.subr.bf16.mxu1 %v881_v0 }
  0x25   :  { %717 = vmatpush3.bf16.msra.mxu0 %v716_v14 }
  0x26   :  { %734 = vmatprep.subr.bf16.mxu0 %v881_v0 }
  0x89   :  { %v970_v16 = vpop.permute.xlu0 %52 }
  0x8a   :  { %v56_v17 = vsel %vm55_vm1, %v968_v15, %v970_v16 }
  0x8b   :  { %640 = vmatmul.mubr.msk.f32.vlgmr.msra.gmra.mrb[0].mxu0 %vm66_vm2, %v56_v17 }
  0x8c   :  { %684 = vmatprep.mubr.msk.f32.mxu0 %vm882_vm0, %v883_v1  ;;  %736 = vmatpush3.bf16.msra.mxu0 %v735_v49 }
  0x8d   :  { %737 = vmatprep.subr.bf16.mxu0 %v881_v0 }
  0x90   :  { %739 = vmatpush3.bf16.msra.mxu0 %v738_v51 }
  0x91   :  { %740 = vmatprep.subr.bf16.mxu0 %v881_v0 }
  0x94   :  { %742 = vmatpush3.bf16.msra.mxu0 %v741_v54 }
  0x95   :  { %743 = vmatprep.subr.bf16.mxu0 %v881_v0 }
  0x98   :  { %745 = vmatpush3.bf16.msra.mxu0 %v744_v61 }
 0x15e   :  { %v136_v19 = vpop.f32.mrb[0].mxu0 }
 0x15f   :  { %v137_v20 = vadd.f32 %v136_v19, %v65_v18  ;;  %v641_v21 = vpop.f32.mrb[1].mxu0  ;;  %v436_v18 = vld [vmem:[#allocation3 + $0x18] sm:$0xff] }
 0x160   :  { %v437_v19 = vld [vmem:[#allocation3 + $0x38] sm:$0xff] }
 0x161   :  { %v141_v22 = vsel %vm140_vm3, %v137_v20, -inf  ;;  %v747_v21 = vpack.c.bf16 %v437_v19, %v436_v18 }
 0x162   :  { %142 = vmax.xlane.f32.xlu0 %v141_v22  ;;  %v439_v22 = vld [vmem:[#allocation3 + $0x78] sm:$0xff] }
 0x1ef   :  { %v143_v23 = vpop.xlane.xlu0 %142 }
 0x1f0   :  { %v144_v24 = vsub.f32 %v137_v20, %v143_v23  ;;  %v438_v20 = vld [vmem:[#allocation3 + $0x58] sm:$0xff] }
 0x1f1   :  { %v750_v23 = vpack.c.bf16 %v439_v22, %v438_v20 }
 0x1f2   :  { %v145_v25 = vmul.f32 1.442695, %v144_v24  ;;  %v440_v24 = vld [vmem:[#allocation3 + $0x98] sm:$0xff] }
 0x1f4   :  { %770 = vpow2.f32 %v145_v25  ;;  %v441_v25 = vld [vmem:[#allocation3 + $0xb8] sm:$0xff] }
 0x1fe   :  { %v771_v26 = vpop.eup %770 }
 0x1ff   :  { %v147_v27 = vsel %vm140_vm3, %v771_v26, 0.0 }
 0x200   :  { %148 = vadd.xlane.f32.xlu1 %v147_v27 }
 0x28d   :  { %v149_v31 = vpop.xlane.xlu1 %148 }
 0x28e   :  { %772 = vrcp.f32 %v149_v31 }
 0x298   :  { %v773_v32 = vpop.eup %772 }
 0x299   :  { %v151_v33 = vmul.f32 %v773_v32, %v771_v26  ;;  %v753_v26 = vpack.c.bf16 %v441_v25, %v440_v24 }
 0x29b   :  { %647 = vmatmul.mubr.msk.f32.vlgmr.msra.gmra.mrb[0].mxu1 %vm155_vm7, %v151_v33  ;;  %152 = vst.msk [vmem:[#allocation9] sm:$0x1] %vm140_vm3, %v151_v33 }
 0x29c   :  { %665 = vmatprep.mubr.msk.f32.mxu1 %vm882_vm0, %v883_v1  ;;  %724 = vmatpush3.bf16.msra.mxu1 %v723_v37 }
 0x29d   :  { %725 = vmatprep.subr.bf16.mxu1 %v881_v0 }
 0x2a0   :  { %727 = vmatpush3.bf16.msra.mxu1 %v726_v39 }
 0x2a1   :  { %728 = vmatprep.subr.bf16.mxu1 %v881_v0 }
 0x2a4   :  { %730 = vmatpush3.bf16.msra.mxu1 %v729_v42 }
 0x2a5   :  { %731 = vmatprep.subr.bf16.mxu1 %v881_v0 }
 0x2a8   :  { %733 = vmatpush3.bf16.msra.mxu1 %v732_v45 }
 0x2a9   :  { %746 = vmatprep.subr.bf16.mxu1 %v881_v0 }
 0x36e   :  { %v229_v55 = vpop.f32.mrb[0].mxu1 }
 0x36f   :  { %234 = vrot.lane.b32.xlu1 %v229_v55, %s880_s16  ;;  %v648_v56 = vpop.f32.mrb[1].mxu1 }
 0x3e1   :  { %v235_v57 = vpop.permute.xlu1 %234 }
 0x3e2   :  { %v237_v58 = vsel %vm55_vm1, %v968_v15, %v235_v57 }
 0x3e3   :  { %666 = vmatmul.mubr.msk.f32.vlgmr.msra.gmra.mrb[2].mxu1 %vm66_vm2, %v237_v58 }
 0x3e4   :  { %703 = vmatprep.mubr.msk.f32.mxu1 %vm882_vm0, %v883_v1  ;;  %v330_v1 = vld [vmem:[%s1069_s5 + $0x2] sm:$0x1]  ;;  %748 = vmatpush3.bf16.msra.mxu1 %v747_v21  ;;  %s810_s5 = scalar_lea.vmem %s550_s14, 32 }
 0x3e5   :  { %749 = vmatprep.subr.bf16.mxu1 %v881_v0  ;;  %p812_p10 = scmp.lt.s32.totalorder %s810_s5, %s806_s15 }
 0x3e7   :  { %p813_p11 = por %p812_p10, %p811_p9 }
 0x3e8   :  { %751 = vmatpush3.bf16.msra.mxu1 %v750_v23 }
 0x3e9   :  { %752 = vmatprep.subr.bf16.mxu1 %v881_v0  ;;  %p814_p12 = pnand %p813_p11, %p807_p8 }
 0x3ec   :  { %754 = vmatpush3.bf16.msra.mxu1 %v753_v26 }
 0x3ed   :  { %755 = vmatprep.subr.bf16.mxu1 %v881_v0 }
 0x3f0   :  { %757 = vmatpush3.bf16.msra.mxu1 %v756_v30 }
 0x4b6   :  { %v316_v63 = vpop.f32.mrb[2].mxu1 }
 0x4b7   :  { %v317_v2 = vadd.f32 %v316_v63, %v246_v62  ;;  %v667_v3 = vpop.f32.mrb[3].mxu1 }
 0x4b9   :  { %v320_v4 = vmax.f32 %v317_v2, 0.0 }
 0x4bb   :  { %v321_v5 = vsel %vm55_vm1, %v320_v4, %v970_v16 }
 0x4bc   :  { %685 = vmatmul.mubr.msk.f32.vlgmr.msra.gmra.mrb[2].mxu0 %vm66_vm2, %v321_v5 }
 0x58f   :  { %v400_v6 = vpop.f32.mrb[2].mxu0 }
 0x590   :  { %v401_v7 = vadd.f32 %v400_v6, %v330_v1  ;;  %v686_v8 = vpop.f32.mrb[3].mxu0 }
 0x592   :  { %411 = vrot.lane.b32.xlu1 %v401_v7, %s880_s16  ;;  %v582_v9 = vmul.f32 -1.442695, %v401_v7 }
 0x594   :  { %774 = vpow2.f32 %v582_v9 }
 0x59e   :  { %v775_v10 = vpop.eup %774 }
 0x59f   :  { %v407_v11 = vadd.f32 1.0, %v775_v10 }
 0x5a1   :  { %776 = vrcp.f32 %v407_v11 }
 0x5ab   :  { %v777_v12 = vpop.eup %776 }
 0x5ac   :  { %v421_v31 = vsub.f32 1.0, %v777_v12  ;;  %v427_v33 = vmul.f32 %v777_v12, %v970_v16 }
 0x604   :  { %v412_v13 = vpop.permute.xlu1 %411 }
 0x605   :  { %v414_v14 = vmul.f32 %v777_v12, %v412_v13 }
 0x607   :  { %416 = vrot.lane.b32.xlu1 %v414_v14, %s885_s9 }
 0x679   :  { %v417_v15 = vpop.permute.xlu1 %416 }
 0x67a   :  { %v419_v17 = vadd.f32 %v417_v15, %v401_v7 }
 0x67c   :  { %778 = vtanh.f32 %v419_v17 }
 0x686   :  { %v779_v27 = vpop.eup %778 }
 0x687   :  { %423 = vrot.lane.b32.xlu1 %v779_v27, %s886_s10 }
 0x6f9   :  { %v424_v32 = vpop.permute.xlu1 %423 }
 0x6fa   :  { %v426_v34 = vmul.f32 %v424_v32, %v421_v31 }
 0x6fc   :  { %v428_v35 = vadd.f32 %v427_v33, %v426_v34 }
 0x6fe   :  { %430 = vrot.lane.b32.xlu1 %v428_v35, %s886_s10 }
 0x770   :  { %v431_v36 = vpop.permute.xlu1 %430 }
 0x771   :  { %v435_v37 = vsel %vm55_vm1, %v431_v36, 0.0  ;;  %434 = vst.msk [vmem:[#allocation7] sm:$0x1] %vm433_vm8, %v431_v36 }
 0x772   :  { %704 = vmatmul.mubr.msk.f32.vlgmr.msra.gmra.mrb[4].mxu1 %vm66_vm2, %v435_v37 }
 0x845   :  { %v514_v0 = vpop.f32.mrb[4].mxu1 }
 0x846   :  { %v515_v39 = vadd.f32 %v514_v0, %v444_v38  ;;  %v705_v40 = vpop.f32.mrb[5].mxu1 }
 0x848   :  { %v519_v16 = vsel %vm518_vm9, %v515_v39, -inf }
 0x849   :  { %520 = vmax.xlane.f32.xlu0 %v519_v16 }
 0x8d6   :  { %v521_v41 = vpop.xlane.xlu0 %520 }
 0x8d7   :  { %v522_v42 = vsub.f32 %v515_v39, %v521_v41 }
 0x8d9   :  { %v523_v43 = vmul.f32 1.442695, %v522_v42 }
 0x8db   :  { %780 = vpow2.f32 %v523_v43 }
 0x8e5   :  { %v781_v44 = vpop.eup %780 }
 0x8e6   :  { %v525_v45 = vsel %vm518_vm9, %v781_v44, 0.0 }
 0x8e7   :  { %526 = vadd.xlane.f32.xlu1 %v525_v45 }
 0x8e8   :  { %817 = shalt.err (!%p814_p12)
}
 0x8e9   :  { %s818_s18 = scalar_lea.hbm %s1071_s7, 16 }
 0x8ea   :  { %p819_p13 = scmp.ne.s32.totalorder %s1071_s7, %s818_s18  ;;  %p822_p0 = scmp.lt.u32.totalorder %s818_s18, %s1071_s7 }
 0x8ec   :  { %p824_p1 = pnand %p822_p0, %p819_p13 }
 0x8ee   :  { %827 = shalt.err (!%p824_p1)
}
 0x8ef   :  { %552 = dma.vmem_to_hbm [thread:$0]  %s550_s14, 16, %s1071_s7, [#allocation8]  }
 0x8f0   :  { %s888_s23 = smov [#allocation9]  }
 0x8f1   :  { %s559_s24 = sshll.u32 %s888_s23, 4  ;;  %s560_s24 = int_to_ptr.vmem [resolvable:$true] %s559_s24 }
 0x8f2   :  { %s828_s25 = scalar_lea.vmem %s560_s24, 16  ;;  %s832_s0 = scalar_lea.vmem %s560_s24, 32 }
 0x8f3   :  { %p829_p2 = scmp.ne.s32.totalorder %s560_s24, %s828_s25  ;;  %p833_p3 = scmp.lt.s32.totalorder %s560_s24, %s560_s24 }
 0x8f4   :  { %p834_p4 = scmp.lt.s32.totalorder %s832_s0, %s828_s25 }
 0x8f6   :  { %p835_p5 = por %p834_p4, %p833_p3 }
 0x8f8   :  { %p836_p6 = pnand %p835_p5, %p829_p2 }
 0x8fa   :  { %839 = shalt.err (!%p836_p6)
}
 0x8fb   :  { %s840_s27 = scalar_lea.hbm %s1072_s8, 16 }
 0x8fc   :  { %p841_p7 = scmp.ne.s32.totalorder %s1072_s8, %s840_s27  ;;  %p844_p8 = scmp.lt.u32.totalorder %s840_s27, %s1072_s8 }
 0x8fe   :  { %p846_p9 = pnand %p844_p8, %p841_p7 }
 0x900   :  { %849 = shalt.err (!%p846_p9)
}
 0x901   :  { %562 = dma.vmem_to_hbm [thread:$0]  %s560_s24, 16, %s1072_s8, [#allocation8]  }
 0x902   :  { %s889_s10 = smov [#allocation6]  }
 0x903   :  { %s539_s11 = sshll.u32 %s889_s10, 4  ;;  %s540_s11 = int_to_ptr.vmem [resolvable:$true] %s539_s11 }
 0x904   :  { %s850_s12 = scalar_lea.vmem %s540_s11, 16  ;;  %s854_s13 = scalar_lea.vmem %s540_s11, 32 }
 0x905   :  { %p851_p10 = scmp.ne.s32.totalorder %s540_s11, %s850_s12  ;;  %p855_p11 = scmp.lt.s32.totalorder %s540_s11, %s540_s11 }
 0x906   :  { %p856_p12 = scmp.lt.s32.totalorder %s854_s13, %s850_s12 }
 0x908   :  { %p857_p13 = por %p856_p12, %p855_p11 }
 0x90a   :  { %p858_p0 = pnand %p857_p13, %p851_p10 }
 0x974   :  { %v527_v46 = vpop.xlane.xlu1 %526 }
 0x975   :  { %782 = vlog2.f32 %v527_v46 }
 0x97f   :  { %v783_v47 = vpop.eup %782 }
 0x980   :  { %v529_v48 = vmul.f32 0.6931472, %v783_v47 }
 0x982   :  { %v530_v49 = vadd.f32 %v529_v48, %v521_v41 }
 0x984   :  { %v531_v50 = vsub.f32 %v515_v39, %v530_v49 }
 0x986   :  { %532 = vst.msk [vmem:[#allocation6] sm:$0x1] %vm518_vm9, %v531_v50 }
 0x987   :  { %861 = shalt.err (!%p858_p0)
}
 0x988   :  { %s862_s15 = scalar_lea.hbm %s1070_s6, 16 }
 0x989   :  { %p863_p1 = scmp.ne.s32.totalorder %s1070_s6, %s862_s15  ;;  %p866_p2 = scmp.lt.u32.totalorder %s862_s15, %s1070_s6 }
 0x98b   :  { %p868_p3 = pnand %p866_p2, %p863_p1 }
 0x98d   :  { %871 = shalt.err (!%p868_p3)
}
 0x98e   :  { %542 = dma.vmem_to_hbm [thread:$0]  %s540_s11, 16, %s1070_s6, [#allocation5]  }
 0x98f   :  { %874 = dma.done.wait [#allocation5], 16  }
 0x990   :  { %875 = vsyncadd [#allocation5], 4294967280 }
 0x991   :  { %876 = dma.done.wait [#allocation8], 32  }
 0x992   :  { %877 = vsyncadd [#allocation8], 4294967264 }
 0x993   :  { %572 = vsyncpa [#allocation4], 1 }
 0x994   :  { %573 = vsyncpa [#allocation5], 1 }
 0x995   :  { %574 = vsyncpa [#allocation8], 1 }

</bundles_post_ra>
